<compile_context>
chip_gen: v5e
topology: v5e:2x2
jax: 0.10.0
libtpu: 0.0.40
codegen_flags: <defaults>
</compile_context>

<pallas_src>
import functools

import jax
import jax.numpy as jnp
from jax import lax
from jax.experimental import pallas as pl
from jax.experimental.pallas import tpu as pltpu


def _round_up(x, m):
    return (x + m - 1) // m * m


# ----------------------------------------------------------------------------
# Kernel 1: fused 3x3 stride-1 conv + BN bias + shortcut + ReLU
#   grid = (N, Cp // TN); 9-tap accumulation happens inside the kernel.
# ----------------------------------------------------------------------------
def _tap_conv_kernel(*refs, relu, mode):
    """x_ref  [1, Ho+2, Wo+2, Cin]  spatially padded input (bf16)
       w_ref  [9, Cin, TN]          folded conv+BN weights, tap-major
       b_ref  [1, TN]               folded BN bias (f32, merged in downsample mode)
       r_ref  [1, Ho, Wo, TN]       identity residual     (mode == "identity")
       ps_ref [1, Ho, Wo, Cs]       strided input of the 1x1 shortcut conv
       ws_ref [Cs, TN]              folded 1x1 shortcut weights (mode == "downsample")
       o_ref  [1, Ho, Wo, TN]
    """
    if mode == "plain":
        x_ref, w_ref, b_ref, o_ref = refs
    elif mode == "identity":
        x_ref, w_ref, b_ref, r_ref, o_ref = refs
    else:  # "downsample"
        x_ref, w_ref, b_ref, ps_ref, ws_ref, o_ref = refs

    ho, wo, tn = o_ref.shape[1], o_ref.shape[2], o_ref.shape[3]
    cin = x_ref.shape[3]
    m = ho * wo

    acc = jnp.zeros((m, tn), jnp.float32)
    # Unrolled 9-tap accumulation: shifted VMEM window -> MXU matmul.
    for kh in range(3):
        for kw in range(3):
            tap = x_ref[0, kh:kh + ho, kw:kw + wo, :].reshape(m, cin)
            acc += jnp.dot(tap, w_ref[kh * 3 + kw],
                           preferred_element_type=jnp.float32)

    acc = acc + b_ref[...]                                   # [1, TN] broadcast

    if mode == "identity":
        acc = acc + r_ref[0].reshape(m, tn).astype(jnp.float32)
    elif mode == "downsample":
        ps = ps_ref[0].reshape(m, ps_ref.shape[3])
        acc = acc + jnp.dot(ps, ws_ref[...], preferred_element_type=jnp.float32)

    if relu:
        acc = jnp.maximum(acc, 0.0)
    o_ref[0] = acc.reshape(ho, wo, tn).astype(o_ref.dtype)


def conv3x3_s1_fused(x_pad, w_taps, bias, *, relu, residual=None, shortcut=None,
                     out_dtype=jnp.float32):
    """x_pad [N, Ho+2, Wo+2, Cin] bf16; w_taps [9, Cin, Cp]; bias [1, Cp] f32."""
    N, Hp, Wp, Cin = x_pad.shape
    Ho, Wo = Hp - 2, Wp - 2
    Cp = w_taps.shape[2]
    TN = Cp if Cp <= 512 else (256 if Cp % 256 == 0 else 128)
    ncol = Cp // TN

    args = [x_pad, w_taps, bias]
    in_specs = [
        pl.BlockSpec((1, Hp, Wp, Cin), lambda n, j: (n, 0, 0, 0)),
        pl.BlockSpec((9, Cin, TN), lambda n, j: (0, 0, j)),
        pl.BlockSpec((1, TN), lambda n, j: (0, j)),
    ]
    flops = 2 * N * Ho * Wo * 9 * Cin * Cp

    if shortcut is not None:
        mode = "downsample"
        ps, ws = shortcut
        Cs = ps.shape[3]
        args += [ps, ws]
        in_specs += [
            pl.BlockSpec((1, Ho, Wo, Cs), lambda n, j: (n, 0, 0, 0)),
            pl.BlockSpec((Cs, TN), lambda n, j: (0, j)),
        ]
        flops += 2 * N * Ho * Wo * Cs * Cp
    elif residual is not None:
        mode = "identity"
        args.append(residual)
        in_specs.append(pl.BlockSpec((1, Ho, Wo, TN), lambda n, j: (n, 0, 0, j)))
    else:
        mode = "plain"

    bytes_accessed = (N * Ho * Wo * Cp * jnp.dtype(out_dtype).itemsize
                      + sum(int(a.size) * a.dtype.itemsize for a in args))

    kernel = functools.partial(_tap_conv_kernel, relu=relu, mode=mode)
    # Grid: batch first ("parallel") so both v7x TensorCores get samples;
    # with TN == Cp the weight block index is constant -> streamed once.
    return pl.pallas_call(
        kernel,
        out_shape=jax.ShapeDtypeStruct((N, Ho, Wo, Cp), out_dtype),
        grid=(N, ncol),
        in_specs=in_specs,
        out_specs=pl.BlockSpec((1, Ho, Wo, TN), lambda n, j: (n, 0, 0, j)),
        compiler_params=pltpu.CompilerParams(
            dimension_semantics=("parallel", "parallel"),
            vmem_limit_bytes=40 * 1024 * 1024,
        ),
        cost_estimate=pl.CostEstimate(flops=flops, transcendentals=0,
                                      bytes_accessed=bytes_accessed),
    )(*args)


# ----------------------------------------------------------------------------
# Kernel 2: GEMM + bias + ReLU (used only for the strided conv1)
# ----------------------------------------------------------------------------
def _gemm_bias_act_kernel(p_ref, w_ref, b_ref, o_ref, *, relu):
    acc = jnp.dot(p_ref[...], w_ref[...], preferred_element_type=jnp.float32)
    acc = acc + b_ref[...]
    if relu:
        acc = jnp.maximum(acc, 0.0)
    o_ref[...] = acc.astype(o_ref.dtype)


def _pick_tm(m, cap=512):
    """Largest multiple-of-8 tile that divides m (<= cap), preferring >=2 tiles."""
    best = None
    for tm in range(8, min(cap, m) + 1, 8):
        if m % tm == 0 and (m // tm >= 2 or best is None):
            best = tm
    if best is None:
        best = min(cap, _round_up(m, 8))
    return best


def gemm_bias_act(patches, w, bias, *, relu, out_dtype):
    """patches [M, K] (bf16, K unpadded) @ w [K, Cp] + bias, relu."""
    M, K = patches.shape
    Cp = w.shape[1]
    TN = Cp if Cp <= 512 else (256 if Cp % 256 == 0 else 128)
    TM = _pick_tm(M)
    Mp = _round_up(M, TM)
    if Mp != M:
        patches = jnp.pad(patches, ((0, Mp - M), (0, 0)))

    out = pl.pallas_call(
        functools.partial(_gemm_bias_act_kernel, relu=relu),
        out_shape=jax.ShapeDtypeStruct((Mp, Cp), out_dtype),
        grid=(Mp // TM, Cp // TN),
        in_specs=[
            pl.BlockSpec((TM, K), lambda i, j: (i, 0)),    # full (unpadded) K
            pl.BlockSpec((K, TN), lambda i, j: (0, j)),    # grid-invariant if 1 col
            pl.BlockSpec((1, TN), lambda i, j: (0, j)),
        ],
        out_specs=pl.BlockSpec((TM, TN), lambda i, j: (i, j)),
        compiler_params=pltpu.CompilerParams(
            dimension_semantics=("parallel", "parallel"),
            vmem_limit_bytes=40 * 1024 * 1024,
        ),
        cost_estimate=pl.CostEstimate(
            flops=2 * Mp * K * Cp, transcendentals=0,
            bytes_accessed=(int(patches.size) * patches.dtype.itemsize
                            + int(w.size) * w.dtype.itemsize
                            + int(bias.size) * 4
                            + Mp * Cp * jnp.dtype(out_dtype).itemsize)),
    )(patches, w, bias)
    return out if Mp == M else out[:M]


# ----------------------------------------------------------------------------
# Plain-JAX glue: BN folding and (stride>1 only) light im2col
# ----------------------------------------------------------------------------
def _bn_scale_bias(bn, conv_bias=None, eps=1e-5):
    gamma, beta, mean, var = bn
    scale = gamma / jnp.sqrt(var + eps)
    bias = beta - mean * scale
    if conv_bias is not None:
        bias = bias + conv_bias * scale
    return scale, bias


def fold_bn_conv3x3(w_oihw, bn, *, cin_pad=None, cout_pad=None,
                    dtype=jnp.bfloat16, eps=1e-5):
    """OIHW 3x3 weights + BN -> (w_taps [9, Cin(_pad), Cout_pad], bias [1, Cout_pad])."""
    scale, bias = _bn_scale_bias(bn, eps=eps)
    cout, cin = w_oihw.shape[0], w_oihw.shape[1]
    w = jnp.transpose(w_oihw, (2, 3, 1, 0)).reshape(9, cin, cout)
    w = w * scale[None, None, :]
    cin_p = cin if cin_pad is None else cin_pad
    cout_p = cout if cout_pad is None else cout_pad
    w = jnp.pad(w, ((0, 0), (0, cin_p - cin), (0, cout_p - cout)))
    b = jnp.pad(bias, (0, cout_p - cout)).reshape(1, cout_p)
    return w.astype(dtype), b.astype(jnp.float32)


def fold_bn_conv1x1(w_oihw, bn, conv_bias, *, cout_pad=None,
                    dtype=jnp.bfloat16, eps=1e-5):
    scale, bias = _bn_scale_bias(bn, conv_bias=conv_bias, eps=eps)
    cout = w_oihw.shape[0]
    w = jnp.transpose(w_oihw[:, :, 0, 0], (1, 0)) * scale[None, :]   # [Cin, Cout]
    cout_p = cout if cout_pad is None else cout_pad
    w = jnp.pad(w, ((0, 0), (0, cout_p - cout)))
    b = jnp.pad(bias, (0, cout_p - cout)).reshape(1, cout_p)
    return w.astype(dtype), b.astype(jnp.float32)


def im2col(x_nhwc, ksize, stride, pad):
    """Light im2col (used only for stride>1 conv1); emits taps in x's dtype (bf16)."""
    N, H, W, C = x_nhwc.shape
    xp = jnp.pad(x_nhwc, ((0, 0), (pad, pad), (pad, pad), (0, 0)))
    Ho = (H + 2 * pad - ksize) // stride + 1
    Wo = (W + 2 * pad - ksize) // stride + 1
    taps = [xp[:, kh:kh + Ho * stride:stride, kw:kw + Wo * stride:stride, :]
            for kh in range(ksize) for kw in range(ksize)]
    p = jnp.stack(taps, axis=-2)                 # [N, Ho, Wo, k*k, C]
    return p.reshape(N * Ho * Wo, ksize * ksize * C), Ho, Wo


# ----------------------------------------------------------------------------
# BasicBlock forward
# ----------------------------------------------------------------------------
def basic_block_forward(x_nchw, params, in_planes, planes, stride,
                        compute_dtype=jnp.bfloat16):
    # Single NCHW->NHWC + f32->bf16 pass over the input.
    x = jnp.transpose(x_nchw, (0, 2, 3, 1)).astype(compute_dtype)
    N, H, W, Cin = x.shape
    Ho = (H + 2 - 3) // stride + 1
    Wo = (W + 2 - 3) // stride + 1
    Cp = _round_up(planes, 128)      # lane-dense channel dim, kept between stages

    # ---- conv1 (3x3, stride) + bn1 + relu -> [N, Ho, Wo, Cp] bf16 ----
    w1, b1 = fold_bn_conv3x3(params["w1"], params["bn1"], cout_pad=Cp,
                             dtype=compute_dtype)
    if stride == 1:
        x_pad = jnp.pad(x, ((0, 0), (1, 1), (1, 1), (0, 0)))
        out1 = conv3x3_s1_fused(x_pad, w1, b1, relu=True, out_dtype=compute_dtype)
    else:
        # TODO(synk): strided 3x3 conv still uses a (light, 9/stride^2) im2col.
        patches, _, _ = im2col(x, 3, stride, 1)                  # bf16, unpadded K
        out1 = gemm_bias_act(patches, w1.reshape(9 * Cin, Cp), b1,
                             relu=True, out_dtype=compute_dtype)
        out1 = out1.reshape(N, Ho, Wo, Cp)

    # ---- conv2 (3x3, s1) + bn2 + shortcut + relu -> [N, Ho, Wo, Cp] f32 ----
    w2, b2 = fold_bn_conv3x3(params["w2"], params["bn2"], cin_pad=Cp, cout_pad=Cp,
                             dtype=compute_dtype)
    out1_pad = jnp.pad(out1, ((0, 0), (1, 1), (1, 1), (0, 0)))

    if stride != 1 or in_planes != planes:
        ws, bs = fold_bn_conv1x1(params["w_s"], params["bn_s"], params["b_s"],
                                 cout_pad=Cp, dtype=compute_dtype)
        bias2 = b2 + bs                       # merged bias: one less DMA/add per tile
        ps = x[:, ::stride, ::stride, :]      # 1x1/stride-s shortcut input, unpadded C
        out = conv3x3_s1_fused(out1_pad, w2, bias2, relu=True,
                               shortcut=(ps, ws), out_dtype=jnp.float32)
    else:
        res = jnp.pad(x, ((0, 0), (0, 0), (0, 0), (0, Cp - Cin)))
        out = conv3x3_s1_fused(out1_pad, w2, b2, relu=True,
                               residual=res, out_dtype=jnp.float32)

    out = out[..., :planes]
    return jnp.transpose(out, (0, 3, 1, 2))      # back to NCHW (module contract)


# ----------------------------------------------------------------------------
# Pure-JAX reference (lax.conv, f32 HIGHEST precision) for correctness check
# ----------------------------------------------------------------------------
def reference_block(x_nchw, params, in_planes, planes, stride, eps=1e-5):
    x = jnp.transpose(x_nchw, (0, 2, 3, 1))

    def conv(inp, w_oihw, s, pad):
        w_hwio = jnp.transpose(w_oihw, (2, 3, 1, 0))
        return lax.conv_general_dilated(
            inp, w_hwio, (s, s), [(pad, pad), (pad, pad)],
            dimension_numbers=("NHWC", "HWIO", "NHWC"),
            precision=lax.Precision.HIGHEST,
        )

    def bn(inp, bn_p):
        g, b, m, v = bn_p
        return (inp - m) / jnp.sqrt(v + eps) * g + b

    out = jax.nn.relu(bn(conv(x, params["w1"], stride, 1), params["bn1"]))
    out = bn(conv(out, params["w2"], 1, 1), params["bn2"])
    if stride != 1 or in_planes != planes:
        sc = conv(x, params["w_s"], stride, 0) + params["b_s"]
        sc = bn(sc, params["bn_s"])
    else:
        sc = x
    out = jax.nn.relu(out + sc)
    return jnp.transpose(out, (0, 3, 1, 2))


# ----------------------------------------------------------------------------
if __name__ == "__main__":
    def make_params(key, in_planes, planes):
        ks = jax.random.split(key, 8)

        def bn_params(k):
            k1, k2, k3, k4 = jax.random.split(k, 4)
            gamma = 1.0 + 0.1 * jax.random.normal(k1, (planes,), jnp.float32)
            beta = 0.05 * jax.random.normal(k2, (planes,), jnp.float32)
            mean = 0.1 * jax.random.normal(k3, (planes,), jnp.float32)
            var = 0.5 + jnp.abs(jax.random.normal(k4, (planes,), jnp.float32))
            return (gamma, beta, mean, var)

        return {
            "w1": 0.1 * jax.random.normal(ks[0], (planes, in_planes, 3, 3), jnp.float32),
            "w2": 0.1 * jax.random.normal(ks[1], (planes, planes, 3, 3), jnp.float32),
            "w_s": 0.1 * jax.random.normal(ks[2], (planes, in_planes, 1, 1), jnp.float32),
            "b_s": 0.05 * jax.random.normal(ks[3], (planes,), jnp.float32),
            "bn1": bn_params(ks[4]),
            "bn2": bn_params(ks[5]),
            "bn_s": bn_params(ks[6]),
        }

    key = jax.random.PRNGKey(0)
    k_cfg = jax.random.split(key, 4)

    # Config 1: downsample path (stride=2, channel change) -> fused 1x1 shortcut
    # Config 2: identity path (stride=1, same channels)    -> residual add
    configs = [
        dict(in_planes=4, planes=8, stride=2, N=2, H=16, W=16),
        dict(in_planes=8, planes=8, stride=1, N=2, H=16, W=16),
    ]

    for ci, cfg in enumerate(configs):
        in_planes, planes, stride = cfg["in_planes"], cfg["planes"], cfg["stride"]
        N, H, W = cfg["N"], cfg["H"], cfg["W"]

        params = make_params(k_cfg[2 * ci], in_planes, planes)
        x = jax.random.normal(k_cfg[2 * ci + 1], (N, in_planes, H, W), jnp.float32)

        out = jax.block_until_ready(
            basic_block_forward(x, params, in_planes, planes, stride)
        )
        ref = jax.block_until_ready(
            reference_block(x, params, in_planes, planes, stride)
        )

        Ho = (H + 2 - 3) // stride + 1
        assert out.shape == (N, planes, Ho, Ho), out.shape
        err = float(jnp.max(jnp.abs(out - ref)))
        tol = 3e-2 * max(1.0, float(jnp.max(jnp.abs(ref))))  # bf16 matmul operands
        assert err <= tol, (ci, err, tol)

    print("KERNEL_OK")
</pallas_src>

<mosaic_0001>
module attributes {stable_mosaic.version = 11 : i64} {
  func.func @_gemm_bias_act_kernel(%arg0: i32, %arg1: i32, %arg2: memref<64x36xbf16, #tpu.memory_space<vmem>>, %arg3: memref<36x128xbf16, #tpu.memory_space<vmem>>, %arg4: memref<1x128xf32, #tpu.memory_space<vmem>>, %arg5: memref<64x128xbf16, #tpu.memory_space<vmem>>) attributes {dimension_semantics = [#tpu.dimension_semantics<parallel>, #tpu.dimension_semantics<parallel>], iteration_bounds = array<i64: 2, 1>, scalar_prefetch = 0 : i64, scratch_operands = 0 : i64, tpu.core_type = #tpu.core_type<tc>, window_params = [{transform_indices = @transform_0, window_bounds = array<i64: 64, 36>}, {transform_indices = @transform_1, window_bounds = array<i64: 36, 128>}, {transform_indices = @transform_2, window_bounds = array<i64: 1, 128>}, {transform_indices = @transform_3, window_bounds = array<i64: 64, 128>}]} {
    %c0 = arith.constant 0 : index
    %c0_0 = arith.constant 0 : index
    %0 = vector.load %arg2[%c0, %c0_0] : memref<64x36xbf16, #tpu.memory_space<vmem>>, vector<64x36xbf16>
    %c0_1 = arith.constant 0 : index
    %c0_2 = arith.constant 0 : index
    %1 = vector.load %arg3[%c0_1, %c0_2] : memref<36x128xbf16, #tpu.memory_space<vmem>>, vector<36x128xbf16>
    %cst = arith.constant dense<0.000000e+00> : vector<64x128xf32>
    %2 = tpu.matmul %0, %1, %cst {dimension_numbers = #tpu.dot_dimension_numbers<[1], [0], [0], [1], [0, 0, 1, 1], [], []>} : vector<64x36xbf16>, vector<36x128xbf16>, vector<64x128xf32> -> vector<64x128xf32>
    %c0_3 = arith.constant 0 : index
    %c0_4 = arith.constant 0 : index
    %3 = vector.load %arg4[%c0_3, %c0_4] : memref<1x128xf32, #tpu.memory_space<vmem>>, vector<1x128xf32>
    %4 = vector.broadcast %3 : vector<1x128xf32> to vector<64x128xf32>
    %5 = arith.addf %2, %4 : vector<64x128xf32>
    %cst_5 = arith.constant 0.000000e+00 : f32
    %6 = vector.broadcast %cst_5 : f32 to vector<64x128xf32>
    %7 = arith.maximumf %5, %6 : vector<64x128xf32>
    %8 = arith.truncf %7 : vector<64x128xf32> to vector<64x128xbf16>
    %c0_6 = arith.constant 0 : index
    %c0_7 = arith.constant 0 : index
    %9 = vector.load %arg5[%c0_6, %c0_7] : memref<64x128xbf16, #tpu.memory_space<vmem>>, vector<64x128xbf16>
    tpu.vector_store %arg5[%c0_6, %c0_7], %8 {strides = array<i32>} : memref<64x128xbf16, #tpu.memory_space<vmem>>, vector<64x128xbf16>,
    return
  }
  func.func @transform_0(%arg0: i32, %arg1: i32) -> (i32, i32) {
    %c0_i32 = arith.constant 0 : i32
    %c0_i32_0 = arith.constant 0 : i32
    return %arg0, %c0_i32 : i32, i32
  }
  func.func @transform_1(%arg0: i32, %arg1: i32) -> (i32, i32) {
    %c0_i32 = arith.constant 0 : i32
    %c0_i32_0 = arith.constant 0 : i32
    return %c0_i32, %arg1 : i32, i32
  }
  func.func @transform_2(%arg0: i32, %arg1: i32) -> (i32, i32) {
    %c0_i32 = arith.constant 0 : i32
    %c0_i32_0 = arith.constant 0 : i32
    return %c0_i32, %arg1 : i32, i32
  }
  func.func @transform_3(%arg0: i32, %arg1: i32) -> (i32, i32) {
    %c0_i32 = arith.constant 0 : i32
    return %arg0, %arg1 : i32, i32
  }
}

</mosaic_0001>

<bundles_post_ra>
// kernel: tpu_custom_call.1
= control target key start
LH: loop header
LB: loop body
LE: loop exit
PB: predicated region body
PF: predicated region fallthrough
CT: control target
= control target key end

     0   :  { %8 = vsyncpa [#allocation3], 0  ;;  %s810_s0 = inlined_call_operand.vmem [shape: bf16[128,36], index: 0, kind: input, shape index: {}]   ;;  %s811_s1 = inlined_call_operand.vmem [shape: bf16[36,128], index: 1, kind: input, shape index: {}]   ;;  %s812_s2 = inlined_call_operand.vmem [shape: f32[1,128], index: 2, kind: input, shape index: {}]   ;;  %s813_s3 = inlined_call_operand.hbm [shape: bf16[128,128], index: 3, kind: output, shape index: {}]  }
   0x1   :  { %10 = vsyncpa [#allocation3 + $0x1], 0  ;;  %s698_s12 = smov 0   ;;  %s700_s13 = smov 0  }
   0x2   :  { %s702_s14 = smov 0   ;;  %s704_s15 = smov 0  }
   0x3   :  { %s706_s16 = smov 0   ;;  %s708_s17 = smov 0  }
   0x4 LB: > { %s456_s18 = sadd.s32 4294967295, %s674_s17   ;;  %s457_s19 = sadd.s32 4294967294, %s674_s17   ;;  %s674_s17 = sphi %s708_s17, %s16_s17   ;;  %s670_s16 = sphi %s706_s16, %s820_s16   ;;  %s666_s15 = sphi %s704_s15, %s819_s15   ;;  %s662_s14 = sphi %s702_s14, %s818_s14   ;;  %s658_s13 = sphi %s700_s13, %s817_s13   ;;  %s654_s12 = sphi %s698_s12, %s816_s12  }
   0x5   : > { %s28_s20 = sadd.s32 1, %s670_s16  ;;  %s115_s21 = sadd.s32 1, %s662_s14 }
   0x6   : > { %p30_p0 = scmp.ge.s32.totalorder %s28_s20, 2  ;;  %p125_p1 = scmp.ne.s32.totalorder %s662_s14, %s658_s13 }
   0x7   : > { %p126_p2 = scmp.eq.s32.totalorder %s456_s18, 1  ;;  %p131_p3 = scmp.ne.s32.totalorder %s658_s13, %s654_s12 }
   0x8   : > { %s822_s20 = smov (%p30_p0, %s28_s20), 0  ;;  %p132_p5 = scmp.eq.s32.totalorder %s457_s19, 1 }
   0x9   : > { %p738_p4 = por %p126_p2, %p125_p1  ;;  %s110_s23 = ssub.s32 %s670_s16, %s822_s20 }
   0xa   : > { %p462_p6 = scmp.ge.s32.totalorder %s674_s17, 1  ;;  %p113_p7 = scmp.eq.s32.totalorder %s110_s23, 0 }
   0xb   : > { %p745_p8 = por %p132_p5, %p131_p3  ;;  %p172_p9 = scmp.lt.s32.totalorder %s674_s17, 3 }
   0xc   : > { %s751_s25 = scalar_select %p113_p7, %s662_s14, %s115_s21  }
   0xd   : > { %p173_p10 = pnand %p462_p6, %p172_p9 }
   0xe   : > { %s464_s28 = sshll.u32 (!%p173_p10), %s666_s15, 3  ;;  %s200_s18 = sand.u32 (!%p173_p10), 1, %s658_s13  }
   0xf   : > { %176 = sbr.rel (%p173_p10) target bundleno = 189 (0xbd), region = 32  ;;  %p204_p11 = scmp.lt.s32.totalorder (!%p173_p10), %s464_s28, 15 }
  0x10   : > { %s463_s19 = sshll.u32 (!%p173_p10), %s200_s18, 5  ;;  %s505_s21 = sshll.u32 (!%p173_p10), %s666_s15, 5 }
  0x11   : > { %s353_s27 = scalar_lea.hbm (!%p173_p10), %s813_s3, %s505_s21  ;;  %s341_s15 = scalar_lea.sflag (!%p173_p10), [#allocation3], %s200_s18 }
  0x12   : > { %s356_s30 = sshll.u32 (!%p173_p10), %s353_s27, 4  ;;  %s616_s8 = scalar_lea.hbm (!%p173_p10), %s813_s3, 64  ;;  %s357_s30 = int_to_ptr.hbm [resolvable:$true] %s356_s30 }
  0x14   : > { %v230_v0 = vld [vmem:[%s811_s1 + $0x10] sm:$0x3]  ;;  %vm283_vm0 = vcmask 1041408   ;;  %s824_s28 = smov (!%p204_p11, %s464_s28), 15  ;;  %v504_v4 = vld [vmem:[%s811_s1 + $0x8] sm:$0xff]  ;;  %v503_v5 = vld [vmem:[%s811_s1] sm:$0xff] }
  0x15   : > { %v264_v1 = vunpack.c.l.b16 %v230_v0  ;;  %s465_s4 = sshll.u32 %s824_s28, 2  ;;  %vm270_vm1 = vcmask 293888   ;;  %v595_v12 = vld [vmem:[%s812_s2] ss:$0 sm:$0xff]  ;;  %s202_s28 = scalar_lea.vmem [#allocation2], %s463_s19 }
  0x16   : > { %s207_s9 = scalar_lea.vmem %s810_s0, %s465_s4  ;;  %s354_s29 = sshll.u32 %s202_s28, 4  ;;  %s355_s29 = int_to_ptr.vmem [resolvable:$true] %s354_s29 }
  0x17   : > { %v267_v2 = vpack.c.b16 %v264_v1, %v264_v1  ;;  %v499_v6 = vld [vmem:[%s207_s9] sm:$0xff]  ;;  %v500_v7 = vld [vmem:[%s207_s9 + $0x8] sm:$0xff]  ;;  %v501_v8 = vld [vmem:[%s207_s9 + $0x10] sm:$0xff]  ;;  %s610_s4 = sshra.s32 %s357_s30, 4  ;;  %s611_s4 = int_to_ptr.hbm [resolvable:$true] %s610_s4 }
  0x18   : > { %v502_v9 = vld [vmem:[%s207_s9 + $0x18] sm:$0xff]  ;;  %s612_s5 = scalar_lea.hbm %s611_s4, 32  ;;  %p617_p1 = scmp.lt.s32.totalorder %s611_s4, %s813_s3 }
  0x19   : > { %v285_v3 = vsel %vm283_vm0, %v267_v2, 0  ;;  %p613_p12 = scmp.ne.s32.totalorder %s611_s4, %s612_s5  ;;  %p618_p2 = scmp.lt.s32.totalorder %s616_s8, %s612_s5 }
  0x1a   : > { %292 = vmatpush.bf16.msra.mxu0 %v285_v3  ;;  %529 = vmatpush.bf16.msra.mxu1 %v285_v3 }
  0x1b   : > { %530 = vmatpush.bf16.msra.mxu2 %v285_v3  ;;  %531 = vmatpush.bf16.msra.mxu3 %v285_v3  ;;  %p614_p13 = pnand %p613_p12, %p738_p4  ;;  %p619_p3 = por %p618_p2, %p617_p1 }
  0x1d   : > { %p615_p0 = pneg %p614_p13 }
  0x1e   : > { %293 = vmatpush.bf16.msra.mxu0 %v504_v4  ;;  %532 = vmatpush.bf16.msra.mxu1 %v504_v4 }
  0x1f   : > { %533 = vmatpush.bf16.msra.mxu2 %v504_v4  ;;  %534 = vmatpush.bf16.msra.mxu3 %v504_v4  ;;  %p620_p5 = pnand %p619_p3, %p615_p0 }
  0x22   : > { %294 = vmatpush.bf16.msra.mxu0 %v503_v5  ;;  %535 = vmatpush.bf16.msra.mxu1 %v503_v5 }
  0x23   : > { %536 = vmatpush.bf16.msra.mxu2 %v503_v5  ;;  %537 = vmatpush.bf16.msra.mxu3 %v503_v5 }
  0x25   : > { %490 = vmatmul.msk.bf16.vlgmr.msra.gmra.mxu0 %vm270_vm1, %v499_v6  ;;  %491 = vmatmul.msk.bf16.vlgmr.msra.gmra.mxu1 %vm270_vm1, %v500_v7 }
  0x26   : > { %492 = vmatmul.msk.bf16.vlgmr.msra.gmra.mxu2 %vm270_vm1, %v501_v8  ;;  %493 = vmatmul.msk.bf16.vlgmr.msra.gmra.mxu3 %vm270_vm1, %v502_v9 }
  0xa2   : > { %v296_v10 = vpop.f32.mrf.mxu0  ;;  %v301_v11 = vpop.f32.mrf.mxu1 }
  0xa3   : > { %v297_v13 = vadd.f32 %v595_v12, %v296_v10  ;;  %v302_v14 = vadd.f32 %v595_v12, %v301_v11 }
  0xa5   : > { %v316_v21 = vmax.f32 %v297_v13, 0.0  ;;  %v318_v22 = vmax.f32 %v302_v14, 0.0 }
  0xa9   : > { %v306_v15 = vpop.f32.mrf.mxu2  ;;  %v311_v16 = vpop.f32.mrf.mxu3 }
  0xaa   : > { %v298_v17 = vpop.f32.mrf.mxu0  ;;  %v303_v18 = vpop.f32.mrf.mxu1  ;;  %v307_v27 = vadd.f32 %v595_v12, %v306_v15  ;;  %v312_v28 = vadd.f32 %v595_v12, %v311_v16 }
  0xab   : > { %v299_v19 = vadd.f32 %v595_v12, %v298_v17  ;;  %v304_v20 = vadd.f32 %v595_v12, %v303_v18 }
  0xac   : > { %v320_v33 = vmax.f32 %v307_v27, 0.0  ;;  %v322_v34 = vmax.f32 %v312_v28, 0.0 }
  0xad   : > { %v317_v23 = vmax.f32 %v299_v19, 0.0  ;;  %v319_v24 = vmax.f32 %v304_v20, 0.0 }
  0xaf   : > { %v509_v25 = vpack.c.bf16 %v317_v23, %v316_v21  ;;  %v514_v26 = vpack.c.bf16 %v319_v24, %v318_v22 }
  0xb1   : > { %510 = vst [vmem:[%s202_s28] sm:$0xff] %v509_v25   ;;  %v308_v29 = vpop.f32.mrf.mxu2  ;;  %v313_v30 = vpop.f32.mrf.mxu3 }
  0xb2   : > { %526 = vst [vmem:[%s202_s28 + $0x8] sm:$0xff] %v514_v26   ;;  %v309_v31 = vadd.f32 %v595_v12, %v308_v29  ;;  %v314_v32 = vadd.f32 %v595_v12, %v313_v30 }
  0xb4   : > { %v321_v35 = vmax.f32 %v309_v31, 0.0  ;;  %v323_v36 = vmax.f32 %v314_v32, 0.0 }
  0xb6   : > { %v519_v37 = vpack.c.bf16 %v321_v35, %v320_v33  ;;  %v524_v38 = vpack.c.bf16 %v323_v36, %v322_v34 }
  0xb8   : > { %527 = vst [vmem:[%s202_s28 + $0x10] sm:$0xff] %v519_v37  }
  0xb9   : > { %528 = vst [vmem:[%s202_s28 + $0x18] sm:$0xff] %v524_v38  }
  0xba   : > { %623 = shalt.err (!%p620_p5)
}
  0xbb   : > { %s676_s11 = smov 64   ;;  %s677_s18 = smov 4  }
  0xbc   : > { %538 = dma.vmem_to_hbm [thread:$0]  (%p738_p4), %s355_s29, 512, %s357_s30, %s341_s15, %s676_s11, %s676_s11, %s677_s18  }
  0xbd PF: > { %p544_p6 = scmp.ge.s32.totalorder %s674_s17, 2  ;;  %s371_s19 = sand.u32 1, %s654_s12  }
  0xbe   : > { %s372_s21 = scalar_lea.sflag [#allocation3], %s371_s19 }
  0xbf   : > { %p541_p7 = pnand %p544_p6, %p745_p8 }
  0xc1   : > { %p542_p9 = pneg %p541_p7 }
  0xc3   : > { %649 = dma.done.wait (%p542_p9), %s372_s21, 512  }
  0xc4   : > { %651 = vsyncadd (%p542_p9), %s372_s21, 4294966784  ;;  %s16_s17 = sadd.s32 1, %s674_s17   ;;  %s816_s12 = smov %s658_s13 }
  0xc5   : > { %p13_p10 = scmp.ge.s32.totalorder %s16_s17, 4   ;;  %s817_s13 = smov %s662_s14 }
  0xc6   : > { %s818_s14 = smov %s751_s25  ;;  %s819_s15 = smov %s670_s16 }
  0xc7   : > { %s820_s16 = smov %s822_s20  ;;  %15 = sbr.rel (!%p13_p10) target bundleno = 4 (0x4), region = 73 }
  0xcc   :  { %378 = vsyncpa [#allocation3], 1 }
  0xcd   :  { %380 = vsyncpa [#allocation3 + $0x1], 1 }

</bundles_post_ra>
